<compile_context>
chip_gen: v7x
topology: tpu7x:2x2x1
jax: 0.10.0
libtpu: 0.0.40
codegen_flags: <defaults>
</compile_context>

<pallas_src>
import functools

import jax
import jax.numpy as jnp
from jax import lax
from jax.experimental import pallas as pl
from jax.experimental.pallas import tpu as pltpu


def _round_up(x, m):
    return (x + m - 1) // m * m


def _pick_padded_out_width(h_out, w_out):
    """Smallest W >= w_out with W % 8 == 0 and (h_out * W) % 128 == 0.

    Keeps the flattened per-image output lane-dense and makes the slab's
    leading-dim collapse a physical no-op.  Always terminates (W = 8*k with
    k a multiple of 16/gcd(h_out,16) works)."""
    w = _round_up(max(w_out, 1), 8)
    while (h_out * w) % 128 != 0:
        w += 8
    return w


def _deconv_kernel(x_ref, w_ref, b_ref, o_ref, slab_ref, *,
                   kh, kw, kp, h_out, w_out):
    """One grid step = Bt batch images.

    x_ref    : (Bt, Hp, Wp, Kp)          bf16 zero-haloed, channel-padded NHWC input
    w_ref    : (Cout, K = kh*kw*Kp)      bf16 flipped + flattened deconv weights
    b_ref    : (Cout, 1)                 f32 bias
    o_ref    : (Bt, Cout, h_out*w_out)   output (NCHW, spatial flattened)
    slab_ref : (Bt, h_out, w_out, K)     bf16 im2col slab scratch
    """
    bt = x_ref.shape[0]
    k_total = kh * kw * kp
    hw = h_out * w_out

    # -- 1. im2col slab: kh*kw full-batch, lane-aligned block copies
    #       (no per-image loop, no reshape of strided views).
    for a in range(kh):
        for c in range(kw):
            tap = a * kw + c
            slab_ref[:, :, :, tap * kp:(tap + 1) * kp] = (
                x_ref[:, a:a + h_out, c:c + w_out, :])

    # -- 2. per-image MXU matmul (bf16 in, f32 accumulate).  Contracting both
    #       operands on their last dim (q.k^T-style) is the MXU-native pattern,
    #       so the big slab is never transposed, and the result comes out in
    #       (Cout, HW) orientation -> lane-dense NCHW stores.  The bias add is
    #       fused into the store (no second full-size f32 temporary).
    for bb in range(bt):
        slab_b = slab_ref[bb].reshape(hw, k_total)        # leading-dim collapse
        acc = lax.dot_general(w_ref[...], slab_b,
                              dimension_numbers=(((1,), (1,)), ((), ())),
                              preferred_element_type=jnp.float32)   # (Cout, HW)
        o_ref[bb] = (acc + b_ref[...]).astype(o_ref.dtype)


def _vmem_capacity_bytes():
    try:
        return int(pltpu.get_tpu_info().vmem_capacity_bytes)
    except Exception:          # query unavailable -> be conservative (v7x: 64 MiB)
        return 64 << 20


def _pick_batch_tile(n, fits, requested=None):
    if requested is not None:
        if n % requested:
            raise ValueError(f"batch_tile={requested} must divide N={n}")
        return requested
    divisors = [d for d in range(1, n + 1) if n % d == 0]
    fitting = [d for d in divisors if fits(d)] or [1]
    # Prefer >= 2 grid steps so input-DMA / compute pipelining (and both cores
    # on dual-TensorCore parts) stay busy; otherwise take the largest tile that
    # fits.  Single-core chips (v5e) lose little here; override with batch_tile=.
    multi_step = [d for d in fitting if n // d >= 2]
    return max(multi_step) if multi_step else max(fitting)


def down_shifted_deconv2d(x_nchw, v, g, b, *, kernel=(2, 3), stride=1,
                          right_shift=False, batch_tile=None,
                          out_dtype=jnp.float32):
    """Forward pass of DownShiftedDeconv2d.

    x_nchw : (N, Cin, H, W) float32
    v      : (Cin, Cout, kh, kw)   weight_norm 'v' of the ConvTranspose2d
    g      : (Cin,)                weight_norm 'g' (dim=0 == in-channel axis)
    b      : (Cout,)               deconv bias
    out_dtype : jnp.float32 (PyTorch parity) or jnp.bfloat16 (halves output
                HBM/VMEM traffic when the consumer layer is bf16).
    returns: (N, Cout, H_out, W_out) float in NCHW, matching PyTorch.
    """
    if stride not in (1, 2):
        raise ValueError("Only 1 or 2 is allowed as stride size for DownShiftedDeconv2d")
    kh, kw = kernel
    N, Cin, H, W = x_nchw.shape
    Cout = v.shape[1]
    op = 0 if stride == 1 else 1             # ConvTranspose2d output_padding
    l = (kw - 1) // 2

    # ---- weight_norm (dim=0 == in-channel axis of ConvTranspose2d weights) ----
    v32 = v.astype(jnp.float32)
    v_norm = jnp.sqrt(jnp.sum(v32 * v32, axis=(1, 2, 3), keepdims=True))
    w_eff = g.reshape(Cin, 1, 1, 1).astype(jnp.float32) * v32 / v_norm   # (Cin,Cout,kh,kw)

    # Transposed conv == correlation with the spatially flipped kernel.
    wf = w_eff[:, :, ::-1, ::-1]

    # Per-tap stripes padded to a lane multiple so every im2col store is unmasked.
    Kp = _round_up(Cin, 128)
    K = kh * kw * Kp
    # w_mat[co, (a*kw+c)*Kp + ci] = wf[ci, co, a, c]; channel-pad rows are zero.
    w_taps = jnp.transpose(wf, (2, 3, 0, 1))                    # (kh, kw, Cin, Cout)
    w_taps = jnp.pad(w_taps, ((0, 0), (0, 0), (0, Kp - Cin), (0, 0)))
    w_mat = w_taps.reshape(K, Cout).T.astype(jnp.bfloat16)      # (Cout, K)
    b_col = b.reshape(Cout, 1).astype(jnp.float32)

    # ---- input: NCHW -> channels-last fused with the bf16 cast ----
    x_c = jnp.transpose(x_nchw, (0, 2, 3, 1)).astype(jnp.bfloat16)
    if stride > 1:
        # TODO(synk): move the stride-2 zero dilation into the kernel (strided
        # scatter into the slab) to cut input HBM traffic ~4x; kept wrapper-side
        # (it fuses with the pad below) for lowering robustness.
        x_c = lax.pad(x_c, jnp.zeros((), x_c.dtype),
                      [(0, 0, 0), (0, 0, stride - 1), (0, 0, stride - 1), (0, 0, 0)])
    Hd, Wd = x_c.shape[1], x_c.shape[2]

    # ---- zero-halo sizes realizing "deconv + down_cut/right_cut" exactly ----
    if right_shift:
        pad_t, pad_bm, pad_l, pad_r = kh - 1, op, kw - 1, op
    else:
        pad_t, pad_bm, pad_l, pad_r = kh - 1, op, kw - 1 - l, kw - 1 - l + op
    H_out = pad_t + Hd + pad_bm - (kh - 1)
    W_out = pad_l + Wd + pad_r - (kw - 1)

    # Lane/sublane-friendly padded output width (extra columns cropped at the end).
    W_out_p = _pick_padded_out_width(H_out, W_out)
    extra_w = W_out_p - W_out
    HWp = H_out * W_out_p
    Hp, Wp = H_out + kh - 1, W_out_p + kw - 1

    # Single fused wrapper pad: spatial halo + output-width alignment + channel pad.
    x_p = jnp.pad(x_c, ((0, 0), (pad_t, pad_bm),
                        (pad_l, pad_r + extra_w), (0, Kp - Cin)))

    out_bytes = jnp.dtype(out_dtype).itemsize

    def step_bytes(bt):
        in_blk = bt * Hp * Wp * Kp * 2            # bf16 input block (double-buffered)
        out_blk = bt * Cout * HWp * out_bytes     # output block (double-buffered)
        slab = bt * HWp * K * 2                   # im2col scratch (single copy)
        weights = Cout * K * 2 + Cout * 4
        headroom = 4 << 20                        # f32 acc / Mosaic internals
        return 2 * in_blk + 2 * out_blk + slab + 2 * weights + headroom

    vmem_cap = _vmem_capacity_bytes()
    budget = (vmem_cap * 3) // 4
    Bt = _pick_batch_tile(N, lambda bt: step_bytes(bt) <= budget, batch_tile)
    vmem_limit = int(min(max(step_bytes(Bt), 16 << 20), vmem_cap))
    grid = (N // Bt,)
    # TODO(synk): for tiny N on dual-TensorCore parts (v7x), add an H_out
    # row-tile grid axis so every core still gets >= 2 pipelined steps.

    kern = functools.partial(_deconv_kernel, kh=kh, kw=kw, kp=Kp,
                             h_out=H_out, w_out=W_out_p)

    out_flat = pl.pallas_call(
        kern,
        out_shape=jax.ShapeDtypeStruct((N, Cout, HWp), out_dtype),
        grid_spec=pltpu.PrefetchScalarGridSpec(
            num_scalar_prefetch=0,
            grid=grid,
            in_specs=[
                pl.BlockSpec((Bt, Hp, Wp, Kp), lambda n: (n, 0, 0, 0)),
                pl.BlockSpec((Cout, K), lambda n: (0, 0)),
                pl.BlockSpec((Cout, 1), lambda n: (0, 0)),
            ],
            out_specs=pl.BlockSpec((Bt, Cout, HWp), lambda n: (n, 0, 0)),
            scratch_shapes=[
                pltpu.VMEM((Bt, H_out, W_out_p, K), jnp.bfloat16),   # im2col slab
            ]),
        compiler_params=pltpu.CompilerParams(
            dimension_semantics=("parallel",),
            vmem_limit_bytes=vmem_limit),
        cost_estimate=pl.CostEstimate(
            flops=2 * N * HWp * K * Cout,
            transcendentals=0,
            bytes_accessed=(N * Hp * Wp * Kp * 2 + Cout * K * 2 + Cout * 4
                            + N * Cout * HWp * out_bytes)),
    )(x_p, w_mat, b_col)

    # (N, Cout, H_out*W_out_p) -> NCHW; the reshape is free, the crop only runs
    # when W_out needed lane padding.
    out = out_flat.reshape(N, Cout, H_out, W_out_p)
    if extra_w:
        out = out[:, :, :, :W_out]
    return out


def _reference_deconv(x, v, g, b, kernel, stride, right_shift):
    """Pure-XLA reference (ConvTranspose2d + crop) with identical bf16 rounding."""
    kh, kw = kernel
    Cin, Cout = v.shape[0], v.shape[1]
    op = 0 if stride == 1 else 1
    v32 = v.astype(jnp.float32)
    v_norm = jnp.sqrt(jnp.sum(v32 * v32, axis=(1, 2, 3), keepdims=True))
    w_eff = g.reshape(Cin, 1, 1, 1).astype(jnp.float32) * v32 / v_norm
    w_eff = w_eff.astype(jnp.bfloat16).astype(jnp.float32)
    xr = x.astype(jnp.bfloat16).astype(jnp.float32)
    # ConvTranspose2d == lhs-dilated correlation with the flipped, swapped kernel.
    w_conv = jnp.transpose(w_eff, (1, 0, 2, 3))[:, :, ::-1, ::-1]   # (Cout,Cin,kh,kw)
    y = lax.conv_general_dilated(
        xr, w_conv, window_strides=(1, 1),
        padding=[(kh - 1, kh - 1 + op), (kw - 1, kw - 1 + op)],
        lhs_dilation=(stride, stride),
        dimension_numbers=("NCHW", "OIHW", "NCHW"),
        precision=lax.Precision.HIGHEST) + b.reshape(1, Cout, 1, 1)
    Hf, Wf = y.shape[2], y.shape[3]
    if right_shift:                                 # right_cut
        return y[:, :, :Hf - kh + 1, :Wf - kw + 1]
    l = (kw - 1) // 2                               # down_cut
    return y[:, :, :Hf - kh + 1, l:Wf - l]


if __name__ == "__main__":
    key = jax.random.PRNGKey(0)
    k_x, k_v, k_b = jax.random.split(key, 3)

    N, Cin, Cout, H, W = 2, 4, 16, 16, 16
    kernel = (2, 3)

    x = jax.random.normal(k_x, (N, Cin, H, W), jnp.float32)
    v = jax.random.normal(k_v, (Cin, Cout, kernel[0], kernel[1]), jnp.float32) * 0.1
    # PyTorch weight_norm initializes g = ||v|| per dim-0 slice; mimic that.
    g = jnp.sqrt(jnp.sum(v * v, axis=(1, 2, 3)))
    b = jax.random.normal(k_b, (Cout,), jnp.float32) * 0.05

    for stride, right_shift in ((1, False), (1, True), (2, False), (2, True)):
        out = down_shifted_deconv2d(x, v, g, b, kernel=kernel, stride=stride,
                                    right_shift=right_shift)
        out = jax.block_until_ready(out)
        ref = _reference_deconv(x, v, g, b, kernel, stride, right_shift)
        assert out.shape == ref.shape, (stride, right_shift, out.shape, ref.shape)
        err = float(jnp.max(jnp.abs(out - ref)))
        assert err < 5e-3, f"mismatch (stride={stride}, right_shift={right_shift}): {err}"

    print("KERNEL_OK")
</pallas_src>

<mosaic_0001>
module attributes {stable_mosaic.version = 11 : i64} {
  func.func @_deconv_kernel(%arg0: i32, %arg1: memref<1x17x18x128xbf16, #tpu.memory_space<vmem>>, %arg2: memref<16x768xbf16, #tpu.memory_space<vmem>>, %arg3: memref<16x1xf32, #tpu.memory_space<vmem>>, %arg4: memref<1x16x256xf32, #tpu.memory_space<vmem>>, %arg5: memref<1x16x16x768xbf16, #tpu.memory_space<vmem>>) attributes {dimension_semantics = [#tpu.dimension_semantics<parallel>], iteration_bounds = array<i64: 2>, scalar_prefetch = 0 : i64, scratch_operands = 1 : i64, tpu.core_type = #tpu.core_type<tc>, window_params = [{transform_indices = @transform_0, window_bounds = array<i64: 1, 17, 18, 128>}, {pipeline_mode = #tpu.pipeline_mode<synchronous>, transform_indices = @transform_1, window_bounds = array<i64: 16, 768>}, {pipeline_mode = #tpu.pipeline_mode<synchronous>, transform_indices = @transform_2, window_bounds = array<i64: 16, 1>}, {transform_indices = @transform_3, window_bounds = array<i64: 1, 16, 256>}]} {
    %c0 = arith.constant 0 : index
    %c0_0 = arith.constant 0 : index
    %c0_1 = arith.constant 0 : index
    %c0_2 = arith.constant 0 : index
    %0 = vector.load %arg1[%c0, %c0_0, %c0_1, %c0_2] : memref<1x17x18x128xbf16, #tpu.memory_space<vmem>>, vector<1x16x16x128xbf16>
    %c0_3 = arith.constant 0 : index
    %c0_4 = arith.constant 0 : index
    %c0_5 = arith.constant 0 : index
    %c0_6 = arith.constant 0 : index
    %1 = vector.load %arg5[%c0_3, %c0_4, %c0_5, %c0_6] : memref<1x16x16x768xbf16, #tpu.memory_space<vmem>>, vector<1x16x16x128xbf16>
    tpu.vector_store %arg5[%c0_3, %c0_4, %c0_5, %c0_6], %0 {strides = array<i32>} : memref<1x16x16x768xbf16, #tpu.memory_space<vmem>>, vector<1x16x16x128xbf16>,
    %c0_7 = arith.constant 0 : index
    %c0_8 = arith.constant 0 : index
    %c1 = arith.constant 1 : index
    %c0_9 = arith.constant 0 : index
    %2 = vector.load %arg1[%c0_7, %c0_8, %c1, %c0_9] : memref<1x17x18x128xbf16, #tpu.memory_space<vmem>>, vector<1x16x16x128xbf16>
    %c0_10 = arith.constant 0 : index
    %c0_11 = arith.constant 0 : index
    %c0_12 = arith.constant 0 : index
    %c128 = arith.constant 128 : index
    %3 = vector.load %arg5[%c0_10, %c0_11, %c0_12, %c128] : memref<1x16x16x768xbf16, #tpu.memory_space<vmem>>, vector<1x16x16x128xbf16>
    tpu.vector_store %arg5[%c0_10, %c0_11, %c0_12, %c128], %2 {strides = array<i32>} : memref<1x16x16x768xbf16, #tpu.memory_space<vmem>>, vector<1x16x16x128xbf16>,
    %c0_13 = arith.constant 0 : index
    %c0_14 = arith.constant 0 : index
    %c2 = arith.constant 2 : index
    %c0_15 = arith.constant 0 : index
    %4 = vector.load %arg1[%c0_13, %c0_14, %c2, %c0_15] : memref<1x17x18x128xbf16, #tpu.memory_space<vmem>>, vector<1x16x16x128xbf16>
    %c0_16 = arith.constant 0 : index
    %c0_17 = arith.constant 0 : index
    %c0_18 = arith.constant 0 : index
    %c256 = arith.constant 256 : index
    %5 = vector.load %arg5[%c0_16, %c0_17, %c0_18, %c256] : memref<1x16x16x768xbf16, #tpu.memory_space<vmem>>, vector<1x16x16x128xbf16>
    tpu.vector_store %arg5[%c0_16, %c0_17, %c0_18, %c256], %4 {strides = array<i32>} : memref<1x16x16x768xbf16, #tpu.memory_space<vmem>>, vector<1x16x16x128xbf16>,
    %c0_19 = arith.constant 0 : index
    %c1_20 = arith.constant 1 : index
    %c0_21 = arith.constant 0 : index
    %c0_22 = arith.constant 0 : index
    %6 = vector.load %arg1[%c0_19, %c1_20, %c0_21, %c0_22] : memref<1x17x18x128xbf16, #tpu.memory_space<vmem>>, vector<1x16x16x128xbf16>
    %c0_23 = arith.constant 0 : index
    %c0_24 = arith.constant 0 : index
    %c0_25 = arith.constant 0 : index
    %c384 = arith.constant 384 : index
    %7 = vector.load %arg5[%c0_23, %c0_24, %c0_25, %c384] : memref<1x16x16x768xbf16, #tpu.memory_space<vmem>>, vector<1x16x16x128xbf16>
    tpu.vector_store %arg5[%c0_23, %c0_24, %c0_25, %c384], %6 {strides = array<i32>} : memref<1x16x16x768xbf16, #tpu.memory_space<vmem>>, vector<1x16x16x128xbf16>,
    %c0_26 = arith.constant 0 : index
    %c1_27 = arith.constant 1 : index
    %c1_28 = arith.constant 1 : index
    %c0_29 = arith.constant 0 : index
    %8 = vector.load %arg1[%c0_26, %c1_27, %c1_28, %c0_29] : memref<1x17x18x128xbf16, #tpu.memory_space<vmem>>, vector<1x16x16x128xbf16>
    %c0_30 = arith.constant 0 : index
    %c0_31 = arith.constant 0 : index
    %c0_32 = arith.constant 0 : index
    %c512 = arith.constant 512 : index
    %9 = vector.load %arg5[%c0_30, %c0_31, %c0_32, %c512] : memref<1x16x16x768xbf16, #tpu.memory_space<vmem>>, vector<1x16x16x128xbf16>
    tpu.vector_store %arg5[%c0_30, %c0_31, %c0_32, %c512], %8 {strides = array<i32>} : memref<1x16x16x768xbf16, #tpu.memory_space<vmem>>, vector<1x16x16x128xbf16>,
    %c0_33 = arith.constant 0 : index
    %c1_34 = arith.constant 1 : index
    %c2_35 = arith.constant 2 : index
    %c0_36 = arith.constant 0 : index
    %10 = vector.load %arg1[%c0_33, %c1_34, %c2_35, %c0_36] : memref<1x17x18x128xbf16, #tpu.memory_space<vmem>>, vector<1x16x16x128xbf16>
    %c0_37 = arith.constant 0 : index
    %c0_38 = arith.constant 0 : index
    %c0_39 = arith.constant 0 : index
    %c640 = arith.constant 640 : index
    %11 = vector.load %arg5[%c0_37, %c0_38, %c0_39, %c640] : memref<1x16x16x768xbf16, #tpu.memory_space<vmem>>, vector<1x16x16x128xbf16>
    tpu.vector_store %arg5[%c0_37, %c0_38, %c0_39, %c640], %10 {strides = array<i32>} : memref<1x16x16x768xbf16, #tpu.memory_space<vmem>>, vector<1x16x16x128xbf16>,
    %c0_40 = arith.constant 0 : index
    %c0_41 = arith.constant 0 : index
    %c0_42 = arith.constant 0 : index
    %c0_43 = arith.constant 0 : index
    %12 = vector.load %arg5[%c0_40, %c0_41, %c0_42, %c0_43] : memref<1x16x16x768xbf16, #tpu.memory_space<vmem>>, vector<1x16x16x768xbf16>
    %13 = vector.shape_cast %12 : vector<1x16x16x768xbf16> to vector<16x16x768xbf16>
    %14 = vector.shape_cast %13 : vector<16x16x768xbf16> to vector<256x768xbf16>
    %c0_44 = arith.constant 0 : index
    %c0_45 = arith.constant 0 : index
    %15 = vector.load %arg2[%c0_44, %c0_45] : memref<16x768xbf16, #tpu.memory_space<vmem>>, vector<16x768xbf16>
    %cst = arith.constant dense<0.000000e+00> : vector<16x256xf32>
    %16 = tpu.matmul %15, %14, %cst {dimension_numbers = #tpu.dot_dimension_numbers<[1], [1], [0], [0], [0, 0, 1, 0], [], []>} : vector<16x768xbf16>, vector<256x768xbf16>, vector<16x256xf32> -> vector<16x256xf32>
    %c0_46 = arith.constant 0 : index
    %c0_47 = arith.constant 0 : index
    %17 = vector.load %arg3[%c0_46, %c0_47] : memref<16x1xf32, #tpu.memory_space<vmem>>, vector<16x1xf32>
    %18 = vector.broadcast %17 : vector<16x1xf32> to vector<16x256xf32>
    %19 = arith.addf %16, %18 : vector<16x256xf32>
    %c0_48 = arith.constant 0 : index
    %c0_49 = arith.constant 0 : index
    %c0_50 = arith.constant 0 : index
    %20 = vector.load %arg4[%c0_48, %c0_49, %c0_50] : memref<1x16x256xf32, #tpu.memory_space<vmem>>, vector<1x16x256xf32>
    %21 = vector.shape_cast %20 : vector<1x16x256xf32> to vector<16x256xf32>
    %22 = vector.shape_cast %19 : vector<16x256xf32> to vector<1x16x256xf32>
    tpu.vector_store %arg4[%c0_48, %c0_49, %c0_50], %22 {strides = array<i32>} : memref<1x16x256xf32, #tpu.memory_space<vmem>>, vector<1x16x256xf32>,
    return
  }
  func.func @transform_0(%arg0: i32) -> (i32, i32, i32, i32) {
    %c0_i32 = arith.constant 0 : i32
    %c0_i32_0 = arith.constant 0 : i32
    %c0_i32_1 = arith.constant 0 : i32
    %c0_i32_2 = arith.constant 0 : i32
    return %arg0, %c0_i32, %c0_i32_0, %c0_i32_1 : i32, i32, i32, i32
  }
  func.func @transform_1(%arg0: i32) -> (i32, i32) {
    %c0_i32 = arith.constant 0 : i32
    %c0_i32_0 = arith.constant 0 : i32
    %c0_i32_1 = arith.constant 0 : i32
    return %c0_i32, %c0_i32_0 : i32, i32
  }
  func.func @transform_2(%arg0: i32) -> (i32, i32) {
    %c0_i32 = arith.constant 0 : i32
    %c0_i32_0 = arith.constant 0 : i32
    %c0_i32_1 = arith.constant 0 : i32
    return %c0_i32, %c0_i32_0 : i32, i32
  }
  func.func @transform_3(%arg0: i32) -> (i32, i32, i32) {
    %c0_i32 = arith.constant 0 : i32
    %c0_i32_0 = arith.constant 0 : i32
    %c0_i32_1 = arith.constant 0 : i32
    return %arg0, %c0_i32, %c0_i32_0 : i32, i32, i32
  }
}

</mosaic_0001>

<bundles_post_ra>
// kernel: tpu_custom_call.1
= control target key start
LH: loop header
LB: loop body
LE: loop exit
PB: predicated region body
PF: predicated region fallthrough
CT: control target
= control target key end

     0   :  { %8 = vsyncpa [#allocation4], 0  ;;  %s3097_s0 = inlined_call_operand.vmem [shape: bf16[2,17,18,128], index: 0, kind: input, shape index: {}]   ;;  %s3098_s1 = inlined_call_operand.vmem [shape: bf16[16,768], index: 1, kind: input, shape index: {}]   ;;  %s3099_s2 = inlined_call_operand.vmem [shape: f32[16,1], index: 2, kind: input, shape index: {}]   ;;  %s3100_s3 = inlined_call_operand.hbm [shape: f32[2,16,256], index: 3, kind: output, shape index: {}]  }
   0x1   :  { %10 = vsyncpa [#allocation4 + $0x1], 0  ;;  %s2744_s12 = smov 0   ;;  %s2746_s13 = smov 0  }
   0x2   :  { %s2748_s14 = smov 0   ;;  %s2750_s15 = smov 0  }
   0x3 LB: > { %s2765_s16 = sadd.s32 4294967295, %s2718_s15   ;;  %s2125_s17 = sadd.s32 4294967294, %s2718_s15   ;;  %s2718_s15 = sphi %s2750_s15, %s3106_s15   ;;  %s2714_s14 = sphi %s2748_s14, %s3105_s14   ;;  %s2710_s13 = sphi %s2746_s13, %s3104_s13   ;;  %s2706_s12 = sphi %s2744_s12, %s3103_s12  }
   0x4   : > { %s2769_s18 = sadd.s32 1, %s2718_s15   ;;  %s91_s19 = sadd.s32 1, %s2714_s14 }
   0x5   : > { %s88_s20 = ssub.s32 %s2718_s15, %s2769_s18  ;;  %p101_p0 = scmp.ne.s32.totalorder %s2714_s14, %s2710_s13 }
   0x6   : > { %p89_p1 = scmp.eq.s32.totalorder %s88_s20, 0  ;;  %p102_p2 = scmp.eq.s32.totalorder %s2765_s16, 1 }
   0x7   : > { %p107_p3 = scmp.ne.s32.totalorder %s2710_s13, %s2706_s12  ;;  %p108_p4 = scmp.eq.s32.totalorder %s2125_s17, 1 }
   0x8   : > { %s2780_s21 = scalar_select %p89_p1, %s2714_s14, %s91_s19  }
   0x9   : > { %p2782_p5 = por %p102_p2, %p101_p0  ;;  %p2786_p6 = por %p108_p4, %p107_p3 }
   0xa   : > { %p2128_p7 = scmp.ge.s32.totalorder %s2718_s15, 1  ;;  %p140_p8 = scmp.lt.s32.totalorder %s2718_s15, 3 }
   0xc   : > { %p141_p9 = pnand %p2128_p7, %p140_p8 }
   0xd   : > { %p164_p10 = scmp.lt.s32.totalorder (!%p141_p9), %s2765_s16, 1  ;;  %v2540_v0 = vld [vmem:[%s3098_s1 + $0xc] ss:$24 sps:$4 sm:$0xff] (!%p141_p9)   ;;  %vm890_vm0 = vcmask (!%p141_p9), 1046528   ;;  %vm489_vm1 = vsmask.f32 (!%p141_p9), 7424 }
   0xe   : > { %144 = sbr.rel (%p141_p9) target bundleno = 517 (0x205), region = 32  ;;  %1991 = vmatprep.mubr.bf16.mxu0 (!%p141_p9), %v2540_v0  ;;  %s161_s27 = sand.u32 (!%p141_p9), 1, %s2710_s13  }
   0xf   : > { %s2430_s4 = sshll.u32 (!%p141_p9), %s2765_s16, 9  ;;  %s2721_s9 = smov (!%p141_p9), [#allocation3]  }
  0x10   : > { %s3054_s7 = scalar_lea.hbm (!%p141_p9), %s3100_s3, %s2430_s4  ;;  %s2660_s10 = sshll.u32 (!%p141_p9), %s2721_s9, 4  ;;  %s2661_s10 = int_to_ptr.vmem [resolvable:$false] %s2660_s10 }
  0x11   : > { %s2662_s11 = scalar_lea.vmem (!%p141_p9), %s2661_s10, 1024 }
  0x15   : > { %s165_s24 = scalar_select %p164_p10, %s2765_s16, 1 }
  0x16   : > { %s3056_s16 = scalar_lea.sflag [#allocation4], %s161_s27 }
  0x17   : > { %s2443_s25 = smul.u32 204, %s165_s24 }
  0x19   : > { %s2797_s28 = scalar_lea.vmem %s3097_s0, %s2443_s25 }
  0x1a   : > { %v2487_v1 = vld [vmem:[%s2797_s28 + $0xc] sm:$0xff]   ;;  %v2488_v2 = vld [vmem:[%s2797_s28] sm:$0xfe]   ;;  %v2489_v3 = vld [vmem:[%s2797_s28 + $0x8] ss:$0 sps:$4 sm:$0x11]  }
  0x1b   : > { %1959 = vmatprep.subr.bf16.mxu0 %v2487_v1  ;;  %v2490_v4 = vld [vmem:[%s2797_s28 + $0x18] sm:$0xff]   ;;  %v891_v5 = vrot.slane %v2488_v2, 1  ;;  %v892_v6 = vrot.slane %v2489_v3, 1  ;;  %v2491_v7 = vld [vmem:[%s2797_s28 + $0xc] sm:$0xfe]   ;;  %v2493_v12 = vld [vmem:[%s2797_s28 + $0x24] sm:$0xff]  }
  0x1c   : > { %v2492_v8 = vld [vmem:[%s2797_s28 + $0x14] ss:$0 sps:$4 sm:$0x11]   ;;  %v894_v10 = vrot.slane %v2491_v7, 1  ;;  %v2494_v13 = vld [vmem:[%s2797_s28 + $0x18] sm:$0xfe]  }
  0x1d   : > { %v893_v9 = vsel %vm890_vm0, %v891_v5, %v892_v6  ;;  %v895_v11 = vrot.slane %v2492_v8, 1  ;;  %v2495_v14 = vld [vmem:[%s2797_s28 + $0x20] ss:$0 sps:$4 sm:$0x11]   ;;  %v897_v16 = vrot.slane %v2494_v13, 1  ;;  %v2496_v21 = vld [vmem:[%s2797_s28 + $0x30] sm:$0xff]  }
  0x1e   : > { %1960 = vmatpush1.bf16.xpose.msra.mxu0 %v893_v9  ;;  %v898_v17 = vrot.slane %v2495_v14, 1  ;;  %v2498_v18 = vld [vmem:[%s2797_s28 + $0x2c] ss:$0 sps:$4 sm:$0x11]   ;;  %v2497_v19 = vld [vmem:[%s2797_s28 + $0x24] sm:$0xfe]  }
  0x1f   : > { %1961 = vmatprep.subr.bf16.mxu0 %v2490_v4  ;;  %v896_v15 = vsel %vm890_vm0, %v894_v10, %v895_v11  ;;  %v900_v22 = vrot.slane %v2497_v19, 1  ;;  %v901_v23 = vrot.slane %v2498_v18, 1  ;;  %v2499_v24 = vld [vmem:[%s2797_s28 + $0x3c] sm:$0xff]   ;;  %v2501_v25 = vld [vmem:[%s2797_s28 + $0x38] ss:$0 sps:$4 sm:$0x11]  }
  0x20   : > { %v899_v20 = vsel %vm890_vm0, %v897_v16, %v898_v17  ;;  %v2500_v27 = vld [vmem:[%s2797_s28 + $0x30] sm:$0xfe]   ;;  %v904_v29 = vrot.slane %v2501_v25, 1  ;;  %v2502_v30 = vld [vmem:[%s2797_s28 + $0x48] sm:$0xff]   ;;  %v2503_v31 = vld [vmem:[%s2797_s28 + $0x3c] sm:$0xfe]  }
  0x21   : > { %v902_v26 = vsel %vm890_vm0, %v900_v22, %v901_v23  ;;  %v903_v28 = vrot.slane %v2500_v27, 1  ;;  %v2504_v32 = vld [vmem:[%s2797_s28 + $0x44] ss:$0 sps:$4 sm:$0x11]   ;;  %v906_v34 = vrot.slane %v2503_v31, 1  ;;  %v2505_v39 = vld [vmem:[%s2797_s28 + $0x54] sm:$0xff]  }
  0x22   : > { %v907_v35 = vrot.slane %v2504_v32, 1  ;;  %v2507_v36 = vld [vmem:[%s2797_s28 + $0x50] ss:$0 sps:$4 sm:$0x11]   ;;  %v2506_v37 = vld [vmem:[%s2797_s28 + $0x48] sm:$0xfe]  }
  0x23   : > { %v905_v33 = vsel %vm890_vm0, %v903_v28, %v904_v29  ;;  %v909_v40 = vrot.slane %v2506_v37, 1  ;;  %v910_v41 = vrot.slane %v2507_v36, 1  ;;  %v2535_v42 = vld [vmem:[%s2797_s28] sm:$0xff]   ;;  %v2509_v43 = vld [vmem:[%s2797_s28 + $0x54] sm:$0xfe]   ;;  %v2545_v53 = vld [vmem:[%s2797_s28 + $0xc] sm:$0xff]  }
  0x24   : > { %v908_v38 = vsel %vm890_vm0, %v906_v34, %v907_v35  ;;  %v2510_v44 = vld [vmem:[%s2797_s28 + $0x5c] ss:$0 sps:$4 sm:$0x11]   ;;  %v2536_v45 = vld [vmem:[%s2797_s28 + $0x8] ss:$0 sps:$4 sm:$0x11]  }
  0x25   : > { %v491_v46 = vshrl.u32 %v2535_v42, 16  ;;  %v493_v47 = vshll.u32 %v2535_v42, 16  ;;  %v498_v48 = vshll.u32 %v2536_v45, 16  ;;  %v911_v49 = vsel %vm890_vm0, %v909_v40, %v910_v41  ;;  %v2508_v50 = vld [vmem:[%s2797_s28 + $0x60] sm:$0xff]   ;;  %v2511_v3 = vld [vmem:[%s2797_s28 + $0x6c] sm:$0xff]   ;;  %v2552_v10 = vld [vmem:[%s2797_s28 + $0x18] sm:$0xff]  }
  0x26   : > { %1962 = vmatpush1.bf16.xpose.msra.mxu0 %v896_v15  ;;  %v2537_v55 = vld [vmem:[%s2797_s28] sm:$0xff]   ;;  %v912_v56 = vrot.slane %v2509_v43, 1  ;;  %v913_v57 = vrot.slane %v2510_v44, 1  ;;  %v2513_v59 = vld [vmem:[%s2797_s28 + $0x68] ss:$0 sps:$4 sm:$0x11]  }
  0x27   : > { %1963 = vmatprep.subr.bf16.mxu0 %v2493_v12  ;;  %v495_v51 = vrot.slane %v493_v47, 1  ;;  %v500_v52 = vrot.slane %v498_v48, 1  ;;  %v2546_v60 = vld [vmem:[%s2797_s28 + $0x14] ss:$0 sps:$4 sm:$0x11]   ;;  %v503_v61 = vshrl.u32 %v2545_v53, 16 }
  0x28   : > { %v505_v62 = vshll.u32 %v2545_v53, 16  ;;  %v2512_v63 = vld [vmem:[%s2797_s28 + $0x60] sm:$0xfe]   ;;  %v510_v1 = vshll.u32 %v2546_v60, 16  ;;  %v914_v2 = vsel %vm890_vm0, %v912_v56, %v913_v57  ;;  %v2547_v6 = vld [vmem:[%s2797_s28 + $0xc] sm:$0xff]   ;;  %v916_v8 = vrot.slane %v2513_v59, 1 }
  0x29   : > { %v496_v54 = vor.u32 %v495_v51, %v491_v46  ;;  %v915_v7 = vrot.slane %v2512_v63, 1  ;;  %v2515_v11 = vld [vmem:[%s2797_s28 + $0x6c] sm:$0xfe]   ;;  %v2516_v12 = vld [vmem:[%s2797_s28 + $0x74] ss:$0 sps:$4 sm:$0x11]  }
  0x2a   : > { %v507_v0 = vrot.slane %v505_v62, 1  ;;  %v512_v5 = vrot.slane %v510_v1, 1  ;;  %v2553_v13 = vld [vmem:[%s2797_s28 + $0x20] ss:$0 sps:$4 sm:$0x11]   ;;  %v515_v14 = vshrl.u32 %v2552_v10, 16 }
  0x2b   : > { %v501_v58 = vsel %vm489_vm1, %v496_v54, %v500_v52  ;;  %v517_v15 = vshll.u32 %v2552_v10, 16  ;;  %v522_v16 = vshll.u32 %v2553_v13, 16  ;;  %v917_v17 = vsel %vm890_vm0, %v915_v7, %v916_v8  ;;  %v2514_v18 = vld [vmem:[%s2797_s28 + $0x78] sm:$0xff]   ;;  %v2559_v25 = vld [vmem:[%s2797_s28 + $0x24] sm:$0xff]   ;;  %v2566_v41 = vld [vmem:[%s2797_s28 + $0x30] sm:$0xff]  }
  0x2c   : > { %1916 = vmatprep.subr.bf16.mxu1 %v501_v58  ;;  %v508_v4 = vor.u32 %v507_v0, %v503_v61  ;;  %v2554_v22 = vld [vmem:[%s2797_s28 + $0x18] sm:$0xff]   ;;  %v918_v23 = vrot.slane %v2515_v11, 1  ;;  %v2519_v28 = vld [vmem:[%s2797_s28 + $0x80] ss:$0 sps:$4 sm:$0x11]   ;;  %v529_v31 = vshll.u32 %v2559_v25, 16 }
  0x2d   : > { %1917 = vmatpush1.bf16.xpose.msra.mxu1 %v2537_v55  ;;  %v519_v19 = vrot.slane %v517_v15, 1  ;;  %v2518_v27 = vld [vmem:[%s2797_s28 + $0x78] sm:$0xfe]   ;;  %v2560_v29 = vld [vmem:[%s2797_s28 + $0x2c] ss:$0 sps:$4 sm:$0x11]  }
  0x2e   : > { %1964 = vmatpush1.bf16.xpose.msra.mxu0 %v899_v20  ;;  %v513_v9 = vsel %vm489_vm1, %v508_v4, %v512_v5  ;;  %v524_v20 = vrot.slane %v522_v16, 1  ;;  %v534_v32 = vshll.u32 %v2560_v29, 16  ;;  %v2517_v34 = vld [vmem:[%s2797_s28 + $0x84] sm:$0xff]   ;;  %v531_v35 = vrot.slane %v529_v31, 1  ;;  %v2568_v54 = vld [vmem:[%s2797_s28 + $0x30] sm:$0xff]   ;;  %v2573_v57 = vld [vmem:[%s2797_s28 + $0x3c] sm:$0xff]  }
  0x2f   : > { %1965 = vmatprep.subr.bf16.mxu0 %v2496_v21  ;;  %1918 = vmatprep.subr.bf16.mxu1 %v513_v9  ;;  %v520_v21 = vor.u32 %v519_v19, %v515_v14  ;;  %v922_v40 = vrot.slane %v2519_v28, 1  ;;  %v2521_v43 = vld [vmem:[%s2797_s28 + $0x84] sm:$0xfe]   ;;  %v2522_v44 = vld [vmem:[%s2797_s28 + $0x8c] ss:$0 sps:$4 sm:$0x11]  }
  0x30   : > { %v536_v36 = vrot.slane %v534_v32, 1  ;;  %v2567_v45 = vld [vmem:[%s2797_s28 + $0x38] ss:$0 sps:$4 sm:$0x11]   ;;  %v539_v46 = vshrl.u32 %v2566_v41, 16  ;;  %v541_v47 = vshll.u32 %v2566_v41, 16 }
  0x31   : > { %v546_v48 = vshll.u32 %v2567_v45, 16  ;;  %v924_v55 = vrot.slane %v2521_v43, 1  ;;  %v925_v56 = vrot.slane %v2522_v44, 1  ;;  %v2524_v59 = vld [vmem:[%s2797_s28 + $0x90] sm:$0xfe]   ;;  %v551_v62 = vshrl.u32 %v2573_v57, 16 }
  0x32   : > { %v543_v51 = vrot.slane %v541_v47, 1  ;;  %v2525_v60 = vld [vmem:[%s2797_s28 + $0x98] ss:$0 sps:$4 sm:$0x11]   ;;  %v553_v63 = vshll.u32 %v2573_v57, 16  ;;  %v927_v7 = vrot.slane %v2524_v59, 1 }
  0x33   : > { %v548_v52 = vrot.slane %v546_v48, 1  ;;  %v2574_v61 = vld [vmem:[%s2797_s28 + $0x44] ss:$0 sps:$4 sm:$0x11]   ;;  %v926_v1 = vsel %vm890_vm0, %v924_v55, %v925_v56  ;;  %v928_v8 = vrot.slane %v2525_v60, 1  ;;  %v2580_v9 = vld [vmem:[%s2797_s28 + $0x48] sm:$0xff]  }
  0x34   : > { %v544_v53 = vor.u32 %v543_v51, %v539_v46  ;;  %v558_v0 = vshll.u32 %v2574_v61, 16  ;;  %v2527_v11 = vld [vmem:[%s2797_s28 + $0x9c] sm:$0xfe]   ;;  %v2581_v13 = vld [vmem:[%s2797_s28 + $0x50] ss:$0 sps:$4 sm:$0x11]  }
  0x35   : > { %1919 = vmatpush1.bf16.xpose.msra.mxu1 %v2547_v6  ;;  %v2575_v6 = vld [vmem:[%s2797_s28 + $0x3c] sm:$0xff]   ;;  %v563_v14 = vshrl.u32 %v2580_v9, 16  ;;  %v565_v15 = vshll.u32 %v2580_v9, 16  ;;  %v570_v16 = vshll.u32 %v2581_v13, 16  ;;  %v2533_v41 = vld [vmem:[%s2797_s28 + $0xb4] sm:$0xfe]  }
  0x36   : > { %1966 = vmatpush1.bf16.xpose.msra.mxu0 %v902_v26  ;;  %v525_v26 = vsel %vm489_vm1, %v520_v21, %v524_v20  ;;  %v549_v58 = vsel %vm489_vm1, %v544_v53, %v548_v52  ;;  %v560_v4 = vrot.slane %v558_v0, 1  ;;  %v2531_v28 = vld [vmem:[%s2797_s28 + $0xb0] ss:$0 sps:$4 sm:$0x11]   ;;  %v936_v56 = vrot.slane %v2533_v41, 1  ;;  %v2596_v60 = vld [vmem:[%s2797_s28 + $0x60] sm:$0xff]  }
  0x37   : > { %1967 = vmatprep.subr.bf16.mxu0 %v2499_v24  ;;  %v919_v24 = vrot.slane %v2516_v12, 1  ;;  %1920 = vmatprep.subr.bf16.mxu1 %v525_v26  ;;  %v2528_v12 = vld [vmem:[%s2797_s28 + $0xa4] ss:$0 sps:$4 sm:$0x11]   ;;  %v567_v19 = vrot.slane %v565_v15, 1  ;;  %v572_v20 = vrot.slane %v570_v16, 1 }
  0x38   : > { %v2588_v29 = vld [vmem:[%s2797_s28 + $0x5c] ss:$0 sps:$4 sm:$0x11]   ;;  %v2541_v45 = vld [vmem:[%s2797_s28 + $0xc] sm:$0xfe]  }
  0x39   : > { %v568_v21 = vor.u32 %v567_v19, %v563_v14  ;;  %v582_v32 = vshll.u32 %v2588_v29, 16  ;;  %v2534_v43 = vld [vmem:[%s2797_s28 + $0xbc] ss:$0 sps:$4 sm:$0x11]   ;;  %v2543_v51 = vld [vmem:[%s2797_s28 + $0xc] sm:$0xff]   ;;  %v1692_v61 = vrot.slane %v2541_v45, 1 }
  0x3a   : > { %v2542_v46 = vld [vmem:[%s2797_s28 + $0x14] ss:$0 sps:$4 sm:$0x11]   ;;  %v2595_v48 = vld [vmem:[%s2797_s28 + $0x68] ss:$0 sps:$4 sm:$0x11]  }
  0x3b   : > { %v573_v26 = vsel %vm489_vm1, %v568_v21, %v572_v20  ;;  %v2544_v47 = vld [vmem:[%s2797_s28 + $0x14] ss:$0 sps:$4 sm:$0x11]   ;;  %v594_v52 = vshll.u32 %v2595_v48, 16  ;;  %v2550_v9 = vld [vmem:[%s2797_s28 + $0x18] sm:$0xff]   ;;  %v2603_v19 = vld [vmem:[%s2797_s28 + $0x6c] sm:$0xff]  }
  0x3c   : > { %v1300_v0 = vshll.u32 %v2544_v47, 16  ;;  %v2556_v29 = vld [vmem:[%s2797_s28 + $0x2c] ss:$0 sps:$4 sm:$0x11]  }
  0x3d   : > { %1921 = vmatpush1.bf16.xpose.msra.mxu1 %v2554_v22  ;;  %v2582_v22 = vld [vmem:[%s2797_s28 + $0x48] sm:$0xff]   ;;  %v596_v57 = vrot.slane %v594_v52, 1  ;;  %v2562_v52 = vld [vmem:[%s2797_s28 + $0x30] sm:$0xfe]  }
  0x3e   : > { %1968 = vmatpush1.bf16.xpose.msra.mxu0 %v905_v33  ;;  %v920_v33 = vsel %vm890_vm0, %v918_v23, %v919_v24  ;;  %v930_v23 = vrot.slane %v2527_v11, 1  ;;  %v931_v24 = vrot.slane %v2528_v12, 1  ;;  %v1293_v12 = vshrl.u32 %v2543_v51, 16 }
  0x3f   : > { %1969 = vmatprep.subr.bf16.mxu0 %v2502_v30  ;;  %v527_v30 = vshrl.u32 %v2559_v25, 16  ;;  %v2587_v25 = vld [vmem:[%s2797_s28 + $0x54] sm:$0xff]  }
  0x40   : > { %v577_v31 = vshll.u32 %v2587_v25, 16 }
  0x41   : > { %v532_v37 = vor.u32 %v531_v35, %v527_v30  ;;  %v575_v30 = vshrl.u32 %v2587_v25, 16  ;;  %v2538_v25 = vld [vmem:[%s3098_s1 + $0x8] ss:$24 sps:$4 sm:$0xff]  }
  0x42   : > { %v579_v35 = vrot.slane %v577_v31, 1  ;;  %v2609_v31 = vld [vmem:[%s2797_s28 + $0x80] ss:$0 sps:$4 sm:$0x11]  }
  0x43   : > { %v537_v42 = vsel %vm489_vm1, %v532_v37, %v536_v36  ;;  %v584_v36 = vrot.slane %v582_v32, 1 }
  0x44   : > { %1922 = vmatprep.subr.bf16.mxu1 %v537_v42  ;;  %v580_v37 = vor.u32 %v579_v35, %v575_v30  ;;  %v2594_v42 = vld [vmem:[%s2797_s28 + $0x60] sm:$0xff]   ;;  %v2558_v30 = vld [vmem:[%s2797_s28 + $0x2c] ss:$0 sps:$4 sm:$0x11]   ;;  %v618_v35 = vshll.u32 %v2609_v31, 16 }
  0x45   : > { %v1324_v48 = vshll.u32 %v2558_v30, 16 }
  0x46   : > { %1970 = vmatpush1.bf16.xpose.msra.mxu0 %v908_v38  ;;  %v2561_v38 = vld [vmem:[%s2797_s28 + $0x24] sm:$0xff]   ;;  %v585_v44 = vsel %vm489_vm1, %v580_v37, %v584_v36  ;;  %v1305_v37 = vshrl.u32 %v2550_v9, 16  ;;  %v620_v41 = vrot.slane %v618_v35, 1 }
  0x47   : > { %1971 = vmatprep.subr.bf16.mxu0 %v2505_v39  ;;  %v921_v39 = vrot.slane %v2518_v27, 1  ;;  %1923 = vmatpush1.bf16.xpose.msra.mxu1 %v2561_v38  ;;  %v2530_v27 = vld [vmem:[%s2797_s28 + $0xa8] sm:$0xfe]   ;;  %v2589_v38 = vld [vmem:[%s2797_s28 + $0x54] sm:$0xff]  }
  0x48   : > { %1924 = vmatprep.subr.bf16.mxu1 %v549_v58  ;;  %v937_v58 = vrot.slane %v2534_v43, 1 }
  0x4a   : > { %v938_v11 = vsel %vm890_vm0, %v936_v56, %v937_v58  ;;  %v2564_v58 = vld [vmem:[%s2797_s28 + $0x30] sm:$0xff]  }
  0x4e   : > { %1972 = vmatpush1.bf16.xpose.msra.mxu0 %v911_v49  ;;  %v923_v49 = vsel %vm890_vm0, %v921_v39, %v922_v40  ;;  %v933_v39 = vrot.slane %v2530_v27, 1  ;;  %v934_v40 = vrot.slane %v2531_v28, 1  ;;  %v2555_v28 = vld [vmem:[%s2797_s28 + $0x24] sm:$0xfe]  }
  0x4f   : > { %1973 = vmatprep.subr.bf16.mxu0 %v2508_v50  ;;  %v2520_v50 = vld [vmem:[%s2797_s28 + $0x90] sm:$0xff]   ;;  %1925 = vmatpush1.bf16.xpose.msra.mxu1 %v2568_v54  ;;  %v2532_v54 = vld [vmem:[%s2797_s28 + $0xc0] sm:$0xff]   ;;  %v1698_v45 = vrot.slane %v2555_v28, 1 }
  0x50   : > { %v935_v53 = vsel %vm890_vm0, %v933_v39, %v934_v40 }
  0x56   : > { %1974 = vmatpush1.bf16.xpose.msra.mxu0 %v914_v2  ;;  %v2523_v2 = vld [vmem:[%s2797_s28 + $0x9c] sm:$0xff]  }
  0x57   : > { %1975 = vmatprep.subr.bf16.mxu0 %v2511_v3  ;;  %v555_v3 = vrot.slane %v553_v63, 1  ;;  %v1295_v63 = vshll.u32 %v2543_v51, 16 }
  0x59   : > { %v556_v5 = vor.u32 %v555_v3, %v551_v62  ;;  %v1693_v62 = vrot.slane %v2542_v46, 1  ;;  %v2548_v3 = vld [vmem:[%s2797_s28 + $0x18] sm:$0xfe]   ;;  %v1297_v13 = vrot.slane %v1295_v63, 1  ;;  %v1699_v46 = vrot.slane %v2556_v29, 1  ;;  %v2624_v29 = vld [vmem:[%s2797_s28 + $0x90] sm:$0xff]  }
  0x5a   : > { %v1695_v20 = vrot.slane %v2548_v3, 1 }
  0x5b   : > { %v561_v10 = vsel %vm489_vm1, %v556_v5, %v560_v4  ;;  %v2549_v4 = vld [vmem:[%s2797_s28 + $0x20] ss:$0 sps:$4 sm:$0x11]   ;;  %v1694_v15 = vsel %vm890_vm0, %v1692_v61, %v1693_v62 }
  0x5c   : > { %1926 = vmatprep.subr.bf16.mxu1 %v561_v10  ;;  %v2551_v5 = vld [vmem:[%s2797_s28 + $0x20] ss:$0 sps:$4 sm:$0x11]   ;;  %v1696_v21 = vrot.slane %v2549_v4, 1  ;;  %v2617_v4 = vld [vmem:[%s2797_s28 + $0x84] sm:$0xff]  }
  0x5d   : > { %1927 = vmatpush1.bf16.xpose.msra.mxu1 %v2575_v6  ;;  %v2602_v6 = vld [vmem:[%s2797_s28 + $0x74] ss:$0 sps:$4 sm:$0x11]  }
  0x5e   : > { %1976 = vmatpush1.bf16.xpose.msra.mxu0 %v917_v17  ;;  %v929_v17 = vsel %vm890_vm0, %v927_v7, %v928_v8  ;;  %1928 = vmatprep.subr.bf16.mxu1 %v573_v26  ;;  %v606_v10 = vshll.u32 %v2602_v6, 16  ;;  %v1298_v26 = vor.u32 %v1297_v13, %v1293_v12  ;;  %v1697_v40 = vsel %vm890_vm0, %v1695_v20, %v1696_v21  ;;  %v2569_v13 = vld [vmem:[%s2797_s28 + $0x3c] sm:$0xfe]  }
  0x5f   : > { %1977 = vmatprep.subr.bf16.mxu0 %v2514_v18  ;;  %v2526_v18 = vld [vmem:[%s2797_s28 + $0xa8] sm:$0xff]   ;;  %v1329_v21 = vshrl.u32 %v2564_v58, 16  ;;  %v1704_v30 = vrot.slane %v2569_v13, 1 }
  0x60   : > { %v608_v16 = vrot.slane %v606_v10, 1  ;;  %v2622_v10 = vld [vmem:[%s2797_s28 + $0x90] sm:$0xff]  }
  0x65   : > { %1929 = vmatpush1.bf16.xpose.msra.mxu1 %v2582_v22  ;;  %v1307_v22 = vshll.u32 %v2550_v9, 16  ;;  %v2571_v9 = vld [vmem:[%s2797_s28 + $0x3c] sm:$0xff]  }
  0x66   : > { %1978 = vmatpush1.bf16.xpose.msra.mxu0 %v920_v33  ;;  %v932_v33 = vsel %vm890_vm0, %v930_v23, %v931_v24  ;;  %1930 = vmatprep.subr.bf16.mxu1 %v585_v44  ;;  %v1312_v23 = vshll.u32 %v2551_v5, 16  ;;  %v2608_v24 = vld [vmem:[%s2797_s28 + $0x78] sm:$0xff]   ;;  %v1701_v5 = vrot.slane %v2562_v52, 1 }
  0x67   : > { %1979 = vmatprep.subr.bf16.mxu0 %v2517_v34  ;;  %v2529_v34 = vld [vmem:[%s2797_s28 + $0xb4] sm:$0xff]   ;;  %v611_v32 = vshrl.u32 %v2608_v24, 16 }
  0x68   : > { %v2610_v44 = vld [vmem:[%s2797_s28 + $0x78] sm:$0xff]  }
  0x6d   : > { %1931 = vmatpush1.bf16.xpose.msra.mxu1 %v2589_v38  ;;  %v1309_v38 = vrot.slane %v1307_v22, 1 }
  0x6e   : > { %1980 = vmatpush1.bf16.xpose.msra.mxu0 %v923_v49  ;;  %v587_v49 = vshrl.u32 %v2594_v42, 16 }
  0x6f   : > { %1981 = vmatprep.subr.bf16.mxu0 %v2520_v50  ;;  %v589_v50 = vshll.u32 %v2594_v42, 16  ;;  %v1314_v42 = vrot.slane %v1312_v23, 1 }
  0x71   : > { %v591_v55 = vrot.slane %v589_v50, 1  ;;  %v1310_v50 = vor.u32 %v1309_v38, %v1305_v37  ;;  %v2576_v38 = vld [vmem:[%s2797_s28 + $0x48] sm:$0xfe]  }
  0x73   : > { %v592_v59 = vor.u32 %v591_v55, %v587_v49  ;;  %v2615_v49 = vld [vmem:[%s2797_s28 + $0x84] sm:$0xff]   ;;  %v2616_v55 = vld [vmem:[%s2797_s28 + $0x8c] ss:$0 sps:$4 sm:$0x11]  }
  0x74   : > { %v623_v56 = vshrl.u32 %v2615_v49, 16 }
  0x76   : > { %1982 = vmatpush1.bf16.xpose.msra.mxu0 %v926_v1  ;;  %v2601_v1 = vld [vmem:[%s2797_s28 + $0x6c] sm:$0xff]  }
  0x77   : > { %1983 = vmatprep.subr.bf16.mxu0 %v2523_v2  ;;  %v597_v2 = vsel %vm489_vm1, %v592_v59, %v596_v57  ;;  %v599_v7 = vshrl.u32 %v2601_v1, 16  ;;  %v601_v8 = vshll.u32 %v2601_v1, 16  ;;  %v625_v57 = vshll.u32 %v2615_v49, 16 }
  0x78   : > { %1932 = vmatprep.subr.bf16.mxu1 %v597_v2  ;;  %v630_v59 = vshll.u32 %v2616_v55, 16  ;;  %v1326_v2 = vrot.slane %v1324_v48, 1  ;;  %v2579_v48 = vld [vmem:[%s2797_s28 + $0x50] ss:$0 sps:$4 sm:$0x11]   ;;  %v2636_v55 = vld [vmem:[%s2797_s28 + $0xa8] sm:$0xff]  }
  0x79   : > { %1933 = vmatpush1.bf16.xpose.msra.mxu1 %v2596_v60  ;;  %v603_v14 = vrot.slane %v601_v8, 1  ;;  %v1315_v60 = vsel %vm489_vm1, %v1310_v50, %v1314_v42  ;;  %v627_v63 = vrot.slane %v625_v57, 1  ;;  %v2578_v42 = vld [vmem:[%s2797_s28 + $0x48] sm:$0xff]  }
  0x7a   : > { %v632_v1 = vrot.slane %v630_v59, 1  ;;  %v1353_v59 = vshrl.u32 %v2578_v42, 16 }
  0x7b   : > { %v628_v3 = vor.u32 %v627_v63, %v623_v56  ;;  %v661_v63 = vshll.u32 %v2636_v55, 16 }
  0x7d   : > { %v633_v12 = vsel %vm489_vm1, %v628_v3, %v632_v1 }
  0x7e   : > { %1984 = vmatpush1.bf16.xpose.msra.mxu0 %v929_v17  ;;  %v1302_v17 = vrot.slane %v1300_v0, 1  ;;  %v1700_v0 = vsel %vm890_vm0, %v1698_v45, %v1699_v46  ;;  %v2577_v45 = vld [vmem:[%s2797_s28 + $0x50] ss:$0 sps:$4 sm:$0x11]  }
  0x7f   : > { %1985 = vmatprep.subr.bf16.mxu0 %v2526_v18  ;;  %v604_v18 = vor.u32 %v603_v14, %v599_v7  ;;  %v1331_v7 = vshll.u32 %v2564_v58, 16  ;;  %v2570_v14 = vld [vmem:[%s2797_s28 + $0x44] ss:$0 sps:$4 sm:$0x11]   ;;  %v1708_v58 = vrot.slane %v2577_v45, 1 }
  0x80   : > { %v1303_v36 = vsel %vm489_vm1, %v1298_v26, %v1302_v17  ;;  %v637_v17 = vshll.u32 %v2622_v10, 16  ;;  %v1705_v31 = vrot.slane %v2570_v14, 1  ;;  %v2643_v14 = vld [vmem:[%s2797_s28 + $0xb4] sm:$0xff]   ;;  %v1874_v45 = vld [vmem:[%s3099_s2] sm:$0xff] }
  0x81   : > { %v609_v27 = vsel %vm489_vm1, %v604_v18, %v608_v16  ;;  %v635_v16 = vshrl.u32 %v2622_v10, 16  ;;  %v1343_v18 = vshll.u32 %v2571_v9, 16  ;;  %v1333_v22 = vrot.slane %v1331_v7, 1  ;;  %v2584_v7 = vld [vmem:[%s2797_s28 + $0x5c] ss:$0 sps:$4 sm:$0x11]  }
  0x82   : > { %1934 = vmatprep.subr.bf16.mxu1 %v609_v27  ;;  %v639_v23 = vrot.slane %v637_v17, 1  ;;  %v2638_v10 = vld [vmem:[%s2797_s28 + $0xa8] sm:$0xff]  }
  0x83   : > { %1935 = vmatpush1.bf16.xpose.msra.mxu1 %v2603_v19  ;;  %v1334_v35 = vor.u32 %v1333_v22, %v1329_v21  ;;  %v671_v21 = vshrl.u32 %v2643_v14, 16  ;;  %v673_v22 = vshll.u32 %v2643_v14, 16 }
  0x84   : > { %v640_v28 = vor.u32 %v639_v23, %v635_v16 }
  0x86   : > { %1986 = vmatpush1.bf16.xpose.msra.mxu0 %v932_v33  ;;  %v613_v33 = vshll.u32 %v2608_v24, 16 }
  0x87   : > { %1987 = vmatprep.subr.bf16.mxu0 %v2529_v34  ;;  %v2557_v34 = vld [vmem:[%s2797_s28 + $0x24] sm:$0xff]  }
  0x88   : > { %v615_v39 = vrot.slane %v613_v33, 1  ;;  %v1319_v47 = vshll.u32 %v2557_v34, 16  ;;  %v1317_v61 = vshrl.u32 %v2557_v34, 16  ;;  %v1345_v33 = vrot.slane %v1343_v18, 1  ;;  %v2629_v34 = vld [vmem:[%s2797_s28 + $0x9c] sm:$0xff]  }
  0x89   : > { %v1711_v18 = vrot.slane %v2584_v7, 1 }
  0x8a   : > { %v616_v43 = vor.u32 %v615_v39, %v611_v32  ;;  %v1321_v62 = vrot.slane %v1319_v47, 1  ;;  %v1341_v32 = vshrl.u32 %v2571_v9, 16  ;;  %v2630_v39 = vld [vmem:[%s2797_s28 + $0xa4] ss:$0 sps:$4 sm:$0x11]   ;;  %v1706_v47 = vsel %vm890_vm0, %v1704_v30, %v1705_v31 }
  0x8b   : > { %v2590_v30 = vld [vmem:[%s2797_s28 + $0x60] sm:$0xfe]   ;;  %v2591_v31 = vld [vmem:[%s2797_s28 + $0x68] ss:$0 sps:$4 sm:$0x11]  }
  0x8c   : > { %v621_v51 = vsel %vm489_vm1, %v616_v43, %v620_v41  ;;  %v649_v41 = vshll.u32 %v2629_v34, 16  ;;  %v654_v43 = vshll.u32 %v2630_v39, 16  ;;  %v1346_v56 = vor.u32 %v1345_v33, %v1341_v32 }
  0x8d   : > { %1936 = vmatprep.subr.bf16.mxu1 %v621_v51  ;;  %v2631_v51 = vld [vmem:[%s2797_s28 + $0x9c] sm:$0xff]  }
  0x8e   : > { %1988 = vmatpush1.bf16.xpose.msra.mxu0 %v935_v53  ;;  %v2563_v53 = vld [vmem:[%s2797_s28 + $0x38] ss:$0 sps:$4 sm:$0x11]   ;;  %1937 = vmatpush1.bf16.xpose.msra.mxu1 %v2610_v44  ;;  %v651_v46 = vrot.slane %v649_v41, 1  ;;  %v656_v49 = vrot.slane %v654_v43, 1  ;;  %v1713_v41 = vrot.slane %v2590_v30, 1 }
  0x8f   : > { %1989 = vmatprep.subr.bf16.mxu0 %v2532_v54  ;;  %v2565_v54 = vld [vmem:[%s2797_s28 + $0x38] ss:$0 sps:$4 sm:$0x11]   ;;  %v1702_v6 = vrot.slane %v2563_v53, 1  ;;  %1938 = vmatprep.subr.bf16.mxu1 %v633_v12  ;;  %v1707_v53 = vrot.slane %v2576_v38, 1  ;;  %v2620_v30 = vld [vmem:[%s2797_s28 + $0x90] sm:$0xff]  }
  0x90   : > { %v1336_v8 = vshll.u32 %v2565_v54, 16  ;;  %v1355_v54 = vshll.u32 %v2578_v42, 16  ;;  %v2586_v12 = vld [vmem:[%s2797_s28 + $0x5c] ss:$0 sps:$4 sm:$0x11]   ;;  %v1714_v42 = vrot.slane %v2591_v31, 1 }
  0x91   : > { %v1703_v24 = vsel %vm890_vm0, %v1701_v5, %v1702_v6  ;;  %v663_v5 = vrot.slane %v661_v63, 1  ;;  %v1709_v6 = vsel %vm890_vm0, %v1707_v53, %v1708_v58  ;;  %v2593_v38 = vld [vmem:[%s2797_s28 + $0x68] ss:$0 sps:$4 sm:$0x11]   ;;  %v2655_v43 = vld [vmem:[%s3098_s1 + $0x14] ss:$24 sps:$4 sm:$0xff]  }
  0x92   : > { %v1338_v27 = vrot.slane %v1336_v8, 1  ;;  %v1357_v3 = vrot.slane %v1355_v54, 1  ;;  %v1715_v53 = vsel %vm890_vm0, %v1713_v41, %v1714_v42  ;;  %v2598_v54 = vld [vmem:[%s2797_s28 + $0x74] ss:$0 sps:$4 sm:$0x11]   ;;  %v1425_v41 = vshrl.u32 %v2620_v30, 16 }
  0x93   : > { %v2600_v58 = vld [vmem:[%s2797_s28 + $0x74] ss:$0 sps:$4 sm:$0x11]  }
  0x94   : > { %v1339_v44 = vsel %vm489_vm1, %v1334_v35, %v1338_v27  ;;  %v2592_v27 = vld [vmem:[%s2797_s28 + $0x60] sm:$0xff]  }
  0x95   : > { %v2650_v35 = vld [vmem:[%s3098_s1 + $0x4] ss:$24 sps:$4 sm:$0xff]   ;;  %v1379_v39 = vshll.u32 %v2592_v27, 16 }
  0x96   : > { %1990 = vmatpush1.bf16.xpose.msra.mxu0 %v938_v11  ;;  %v1322_v11 = vor.u32 %v1321_v62, %v1317_v61  ;;  %1939 = vmatpush1.bf16.xpose.msra.mxu1 %v2617_v4  ;;  %v2637_v61 = vld [vmem:[%s2797_s28 + $0xb0] ss:$0 sps:$4 sm:$0x11]   ;;  %v659_v62 = vshrl.u32 %v2636_v55, 16  ;;  %v2583_v4 = vld [vmem:[%s2797_s28 + $0x54] sm:$0xfe]  }
  0x97   : > { %2002 = vmatprep.subr.bf16.mxu0 %v1694_v15  ;;  %v2623_v15 = vld [vmem:[%s2797_s28 + $0x98] ss:$0 sps:$4 sm:$0x11]   ;;  %v666_v1 = vshll.u32 %v2637_v61, 16  ;;  %v1710_v17 = vrot.slane %v2583_v4, 1  ;;  %1948 = vmatprep.mubr.bf16.mxu1 %v2650_v35  ;;  %v1717_v61 = vrot.slane %v2598_v54, 1 }
  0x98   : > { %v642_v19 = vshll.u32 %v2623_v15, 16  ;;  %v1327_v20 = vsel %vm489_vm1, %v1322_v11, %v1326_v2  ;;  %v664_v9 = vor.u32 %v663_v5, %v659_v62  ;;  %v1358_v15 = vor.u32 %v1357_v3, %v1353_v59  ;;  %v2648_v55 = vld [vmem:[%s3098_s1] ss:$24 sps:$4 sm:$0xff]  }
  0x99   : > { %v668_v8 = vrot.slane %v666_v1, 1  ;;  %v1396_v1 = vshll.u32 %v2600_v58, 16  ;;  %v2604_v4 = vld [vmem:[%s2797_s28 + $0x78] sm:$0xfe]   ;;  %v2634_v58 = vld [vmem:[%s2797_s28 + $0xa8] sm:$0xff]  }
  0x9a   : > { %v644_v26 = vrot.slane %v642_v19, 1  ;;  %v2605_v5 = vld [vmem:[%s2797_s28 + $0x80] ss:$0 sps:$4 sm:$0x11]  }
  0x9b   : > { %v669_v16 = vsel %vm489_vm1, %v664_v9, %v668_v8  ;;  %v1398_v7 = vrot.slane %v1396_v1, 1  ;;  %v2607_v8 = vld [vmem:[%s2797_s28 + $0x80] ss:$0 sps:$4 sm:$0x11]   ;;  %v1451_v1 = vshll.u32 %v2634_v58, 16 }
  0x9d   : > { %1992 = vmatmul.mubr.bf16.vlgmr.msra.gmra.mrb[0].mxu0 %v2538_v25  ;;  %v2572_v25 = vld [vmem:[%s2797_s28 + $0x44] ss:$0 sps:$4 sm:$0x11]  }
  0x9e   : > { %2003 = vmatpush1.bf16.xpose.msra.mxu0 %v1303_v36  ;;  %v645_v36 = vsel %vm489_vm1, %v640_v28, %v644_v26  ;;  %v1348_v37 = vshll.u32 %v2572_v25, 16  ;;  %v1372_v26 = vshll.u32 %v2586_v12, 16  ;;  %v675_v28 = vrot.slane %v673_v22, 1  ;;  %2034 = vmatprep.mubr.bf16.mxu0 %v2655_v43  ;;  %v2614_v22 = vld [vmem:[%s2797_s28 + $0x8c] ss:$0 sps:$4 sm:$0x11]  }
  0x9f   : > { %2004 = vmatprep.subr.bf16.mxu0 %v1697_v40  ;;  %1940 = vmatprep.subr.bf16.mxu1 %v645_v36  ;;  %v647_v40 = vshrl.u32 %v2629_v34, 16  ;;  %v2645_v34 = vld [vmem:[%s2797_s28 + $0xb4] sm:$0xff]  }
  0xa0   : > { %1941 = vmatpush1.bf16.xpose.msra.mxu1 %v2624_v29  ;;  %v1350_v52 = vrot.slane %v1348_v37, 1  ;;  %v1712_v29 = vsel %vm890_vm0, %v1710_v17, %v1711_v18  ;;  %v676_v33 = vor.u32 %v675_v28, %v671_v21  ;;  %v1374_v37 = vrot.slane %v1372_v26, 1  ;;  %v2611_v18 = vld [vmem:[%s2797_s28 + $0x84] sm:$0xfe]  }
  0xa1   : > { %v652_v50 = vor.u32 %v651_v46, %v647_v40  ;;  %v1875_v46 = vld [vmem:[%s3099_s2 + $0x8] sm:$0xff] }
  0xa2   : > { %v1351_v2 = vsel %vm489_vm1, %v1346_v56, %v1350_v52  ;;  %v2599_v52 = vld [vmem:[%s2797_s28 + $0x6c] sm:$0xff]  }
  0xa3   : > { %v657_v57 = vsel %vm489_vm1, %v652_v50, %v656_v49  ;;  %v1381_v49 = vrot.slane %v1379_v39, 1  ;;  %v1384_v50 = vshll.u32 %v2593_v38, 16  ;;  %v1391_v59 = vshll.u32 %v2599_v52, 16 }
  0xa4   : > { %1942 = vmatprep.subr.bf16.mxu1 %v657_v57  ;;  %v1389_v63 = vshrl.u32 %v2599_v52, 16 }
  0xa5   : > { %v1386_v57 = vrot.slane %v1384_v50, 1  ;;  %v2628_v50 = vld [vmem:[%s2797_s28 + $0xa4] ss:$0 sps:$4 sm:$0x11]  }
  0xa6   : > { %2005 = vmatpush1.bf16.xpose.msra.mxu0 %v1315_v60  ;;  %v1360_v60 = vshll.u32 %v2579_v48, 16  ;;  %v1377_v48 = vshrl.u32 %v2592_v27, 16 }
  0xa7   : > { %2006 = vmatprep.subr.bf16.mxu0 %v1700_v0  ;;  %v2585_v0 = vld [vmem:[%s2797_s28 + $0x54] sm:$0xff]  }
  0xa8   : > { %1943 = vmatpush1.bf16.xpose.msra.mxu1 %v2631_v51  ;;  %v1362_v11 = vrot.slane %v1360_v60, 1  ;;  %v1367_v13 = vshll.u32 %v2585_v0, 16  ;;  %v1365_v19 = vshrl.u32 %v2585_v0, 16  ;;  %v2597_v51 = vld [vmem:[%s2797_s28 + $0x6c] sm:$0xfe]   ;;  %v1382_v56 = vor.u32 %v1381_v49, %v1377_v48 }
  0xa9   : > { %1944 = vmatprep.subr.bf16.mxu1 %v669_v16  ;;  %v1716_v60 = vrot.slane %v2597_v51, 1  ;;  %v1393_v0 = vrot.slane %v1391_v59, 1  ;;  %v2613_v16 = vld [vmem:[%s2797_s28 + $0x84] sm:$0xff]  }
  0xaa   : > { %v1369_v23 = vrot.slane %v1367_v13, 1  ;;  %v1363_v25 = vsel %vm489_vm1, %v1358_v15, %v1362_v11  ;;  %v1387_v62 = vsel %vm489_vm1, %v1382_v56, %v1386_v57  ;;  %v1720_v11 = vrot.slane %v2605_v5, 1 }
  0xab   : > { %v1718_v3 = vsel %vm890_vm0, %v1716_v60, %v1717_v61  ;;  %v1408_v15 = vshll.u32 %v2607_v8, 16  ;;  %v1413_v27 = vshrl.u32 %v2613_v16, 16  ;;  %v1444_v57 = vshll.u32 %v2628_v50, 16  ;;  %v2632_v60 = vld [vmem:[%s2797_s28 + $0xa8] sm:$0xfe]   ;;  %v2641_v8 = vld [vmem:[%s2797_s28 + $0xb4] sm:$0xff]  }
  0xac   : > { %v1370_v36 = vor.u32 %v1369_v23, %v1365_v19  ;;  %v2612_v19 = vld [vmem:[%s2797_s28 + $0x8c] ss:$0 sps:$4 sm:$0x11]   ;;  %v1415_v23 = vshll.u32 %v2613_v16, 16  ;;  %v1449_v5 = vshrl.u32 %v2634_v58, 16 }
  0xad   : > { %v1410_v21 = vrot.slane %v1408_v15, 1  ;;  %v2633_v61 = vld [vmem:[%s2797_s28 + $0xb0] ss:$0 sps:$4 sm:$0x11]   ;;  %v1463_v15 = vshll.u32 %v2641_v8, 16 }
  0xae   : > { %2007 = vmatpush1.bf16.xpose.msra.mxu0 %v1327_v20  ;;  %v2644_v20 = vld [vmem:[%s2797_s28 + $0xbc] ss:$0 sps:$4 sm:$0x11]   ;;  %v1417_v28 = vrot.slane %v1415_v23, 1 }
  0xaf   : > { %2008 = vmatprep.subr.bf16.mxu0 %v1703_v24  ;;  %v678_v24 = vshll.u32 %v2644_v20, 16 }
  0xb0   : > { %1945 = vmatpush1.bf16.xpose.msra.mxu1 %v2638_v10  ;;  %v1719_v10 = vrot.slane %v2604_v4, 1 }
  0xb1   : > { %v680_v32 = vrot.slane %v678_v24, 1  ;;  %v1722_v24 = vrot.slane %v2611_v18, 1 }
  0xb2   : > { %v1721_v17 = vsel %vm890_vm0, %v1719_v10, %v1720_v11  ;;  %v2639_v10 = vld [vmem:[%s2797_s28 + $0xb4] sm:$0xfe]   ;;  %v2640_v11 = vld [vmem:[%s2797_s28 + $0xbc] ss:$0 sps:$4 sm:$0x11]  }
  0xb3   : > { %v681_v40 = vsel %vm489_vm1, %v676_v33, %v680_v32  ;;  %v2618_v32 = vld [vmem:[%s2797_s28 + $0x90] sm:$0xfe]   ;;  %v2619_v33 = vld [vmem:[%s2797_s28 + $0x98] ss:$0 sps:$4 sm:$0x11]   ;;  %v1734_v16 = vrot.slane %v2639_v10, 1 }
  0xb4   : > { %1946 = vmatprep.subr.bf16.mxu1 %v681_v40  ;;  %v1725_v38 = vrot.slane %v2618_v32, 1  ;;  %v1726_v39 = vrot.slane %v2619_v33, 1 }
  0xb6   : > { %2009 = vmatpush1.bf16.xpose.msra.mxu0 %v1339_v44  ;;  %v2720_v44 = vmov 0  }
  0xb7   : > { %2010 = vmatprep.subr.bf16.mxu0 %v1706_v47  ;;  %2486 = vset.pattern.permute.xlu0 %v2720_v44  ;;  %v1375_v47 = vsel %vm489_vm1, %v1370_v36, %v1374_v37  ;;  %v2621_v36 = vld [vmem:[%s2797_s28 + $0x98] ss:$0 sps:$4 sm:$0x11]   ;;  %v1427_v37 = vshll.u32 %v2620_v30, 16  ;;  %v2627_v44 = vld [vmem:[%s2797_s28 + $0x9c] sm:$0xff]  }
  0xb8   : > { %1947 = vmatpush1.bf16.xpose.msra.mxu1 %v2645_v34  ;;  %1878 = vperm.xlu0 %2486, %v1874_v45   ;;  %v1418_v34 = vor.u32 %v1417_v28, %v1413_v27  ;;  %v1432_v43 = vshll.u32 %v2621_v36, 16  ;;  %v1727_v45 = vsel %vm890_vm0, %v1725_v38, %v1726_v39  ;;  %v1439_v51 = vshll.u32 %v2627_v44, 16  ;;  %v2652_v28 = vld [vmem:[%s2797_s28 + $0xc8] ss:$0 sps:$4 sm:$0x11]  }
  0xb9   : > { %v1429_v42 = vrot.slane %v1427_v37, 1 }
  0xba   : > { %v1434_v49 = vrot.slane %v1432_v43, 1  ;;  %v1441_v56 = vrot.slane %v1439_v51, 1 }
  0xbb   : > { %v1430_v48 = vor.u32 %v1429_v42, %v1425_v41 }
  0xbc   : > { %1883 = vperm.xlu0 %2486, %v1875_v46   ;;  %v2625_v46 = vld [vmem:[%s2797_s28 + $0x9c] sm:$0xfe]  }
  0xbd   : > { %v1728_v52 = vrot.slane %v2625_v46, 1  ;;  %v1435_v54 = vsel %vm489_vm1, %v1430_v48, %v1434_v49 }
  0xbe   : > { %2011 = vmatpush1.bf16.xpose.msra.mxu0 %v1351_v2  ;;  %v2606_v2 = vld [vmem:[%s2797_s28 + $0x78] sm:$0xff]  }
  0xbf   : > { %2012 = vmatprep.subr.bf16.mxu0 %v1709_v6  ;;  %1949 = vmatmul.mubr.bf16.vlgmr.msra.gmra.mrb[0].mxu1 %v2648_v55  ;;  %v1394_v6 = vor.u32 %v1393_v0, %v1389_v63  ;;  %v1403_v9 = vshll.u32 %v2606_v2, 16  ;;  %v1401_v13 = vshrl.u32 %v2606_v2, 16  ;;  %v1437_v55 = vshrl.u32 %v2627_v44, 16  ;;  %v2635_v0 = vld [vmem:[%s2797_s28 + $0xb0] ss:$0 sps:$4 sm:$0x11]  }
  0xc0   : > { %v1446_v63 = vrot.slane %v1444_v57, 1  ;;  %v1731_v2 = vrot.slane %v2632_v60, 1 }
  0xc1   : > { %v1399_v12 = vsel %vm489_vm1, %v1394_v6, %v1398_v7  ;;  %v1405_v14 = vrot.slane %v1403_v9, 1  ;;  %v1453_v6 = vrot.slane %v1451_v1, 1  ;;  %v1456_v7 = vshll.u32 %v2635_v0, 16 }
  0xc3   : > { %v1406_v20 = vor.u32 %v1405_v14, %v1401_v13  ;;  %v1458_v13 = vrot.slane %v1456_v7, 1  ;;  %v2642_v14 = vld [vmem:[%s2797_s28 + $0xbc] ss:$0 sps:$4 sm:$0x11]  }
  0xc5   : > { %v1411_v26 = vsel %vm489_vm1, %v1406_v20, %v1410_v21  ;;  %v1465_v20 = vrot.slane %v1463_v15, 1  ;;  %v1468_v21 = vshll.u32 %v2642_v14, 16 }
  0xc6   : > { %2013 = vmatpush1.bf16.xpose.msra.mxu0 %v1363_v25  ;;  %v1723_v25 = vrot.slane %v2612_v19, 1  ;;  %v1461_v19 = vshrl.u32 %v2641_v8, 16 }
  0xc7   : > { %2014 = vmatprep.subr.bf16.mxu0 %v1712_v29  ;;  %v1420_v29 = vshll.u32 %v2614_v22, 16  ;;  %v2651_v22 = vld [vmem:[%s2797_s28 + $0xc0] sm:$0xff]   ;;  %v1470_v27 = vrot.slane %v1468_v21, 1 }
  0xc8   : > { %v1724_v31 = vsel %vm890_vm0, %v1722_v24, %v1723_v25  ;;  %v2646_v24 = vld [vmem:[%s2797_s28 + $0xc0] sm:$0xfe]   ;;  %v2647_v25 = vld [vmem:[%s2797_s28 + $0xc8] ss:$0 sps:$4 sm:$0x11]   ;;  %v1473_v33 = vshrl.u32 %v2651_v22, 16 }
  0xc9   : > { %v1422_v35 = vrot.slane %v1420_v29, 1  ;;  %v1475_v29 = vshll.u32 %v2651_v22, 16  ;;  %v1737_v30 = vrot.slane %v2646_v24, 1 }
  0xcb   : > { %v1423_v40 = vsel %vm489_vm1, %v1418_v34, %v1422_v35  ;;  %v1477_v34 = vrot.slane %v1475_v29, 1  ;;  %v1480_v35 = vshll.u32 %v2652_v28, 16 }
  0xcd   : > { %v1478_v37 = vor.u32 %v1477_v34, %v1473_v33  ;;  %v1482_v38 = vrot.slane %v1480_v35, 1 }
  0xce   : > { %2015 = vmatpush1.bf16.xpose.msra.mxu0 %v1375_v47  ;;  %v2626_v47 = vld [vmem:[%s2797_s28 + $0xa4] ss:$0 sps:$4 sm:$0x11]   ;;  %s2129_s28 = sshll.u32 %s161_s27, 5 }
  0xcf   : > { %2016 = vmatprep.subr.bf16.mxu0 %v1715_v53  ;;  %v1729_v53 = vrot.slane %v2626_v47, 1  ;;  %v1483_v39 = vsel %vm489_vm1, %v1478_v37, %v1482_v38  ;;  %s163_s29 = scalar_lea.vmem [#allocation3], %s2129_s28 }
  0xd0   : > { %s2063_s30 = sshll.u32 %s163_s29, 4  ;;  %s3049_s30 = int_to_ptr.vmem [resolvable:$true] %s2063_s30 }
  0xd1   : > { %v1730_v59 = vsel %vm890_vm0, %v1728_v52, %v1729_v53  ;;  %s2656_s8 = scalar_lea.vmem %s3049_s30, 512  ;;  %p2663_p0 = scmp.lt.s32.totalorder %s3049_s30, %s2661_s10 }
  0xd2   : > { %p2657_p11 = scmp.ne.s32.totalorder %s3049_s30, %s2656_s8  ;;  %p2664_p1 = scmp.lt.s32.totalorder %s2662_s11, %s2656_s8 }
  0xd4   : > { %p2658_p12 = pnand %p2657_p11, %p2782_p5  ;;  %p2665_p2 = por %p2664_p1, %p2663_p0 }
  0xd6   : > { %2017 = vmatpush1.bf16.xpose.msra.mxu0 %v1387_v62  ;;  %v1442_v62 = vor.u32 %v1441_v56, %v1437_v55  ;;  %p2659_p13 = pneg %p2658_p12 }
  0xd7   : > { %2018 = vmatprep.subr.bf16.mxu0 %v1718_v3  ;;  %v1732_v3 = vrot.slane %v2633_v61, 1 }
  0xd8   : > { %v1447_v4 = vsel %vm489_vm1, %v1442_v62, %v1446_v63  ;;  %p2666_p3 = pnand %p2665_p2, %p2659_p13 }
  0xd9   : > { %v1733_v9 = vsel %vm890_vm0, %v1731_v2, %v1732_v3 }
  0xde   : > { %2019 = vmatpush1.bf16.xpose.msra.mxu0 %v1399_v12  ;;  %v1454_v12 = vor.u32 %v1453_v6, %v1449_v5 }
  0xdf   : > { %2020 = vmatprep.subr.bf16.mxu0 %v1721_v17  ;;  %v1735_v17 = vrot.slane %v2640_v11, 1 }
  0xe0   : > { %v1459_v18 = vsel %vm489_vm1, %v1454_v12, %v1458_v13 }
  0xe1   : > { %v1736_v23 = vsel %vm890_vm0, %v1734_v16, %v1735_v17 }
  0xe6   : > { %2021 = vmatpush1.bf16.xpose.msra.mxu0 %v1411_v26  ;;  %v1466_v26 = vor.u32 %v1465_v20, %v1461_v19 }
  0xe7   : > { %2022 = vmatprep.subr.bf16.mxu0 %v1724_v31  ;;  %v1738_v31 = vrot.slane %v2647_v25, 1 }
  0xe8   : > { %v1471_v32 = vsel %vm489_vm1, %v1466_v26, %v1470_v27 }
  0xe9   : > { %v1739_v36 = vsel %vm890_vm0, %v1737_v30, %v1738_v31 }
  0xee   : > { %2023 = vmatpush1.bf16.xpose.msra.mxu0 %v1423_v40  ;;  %v2653_v40 = vld [vmem:[%s3098_s1 + $0x10] ss:$24 sps:$4 sm:$0xff]  }
  0xef   : > { %2024 = vmatprep.subr.bf16.mxu0 %v1727_v45 }
  0xf6   : > { %2025 = vmatpush1.bf16.xpose.msra.mxu0 %v1435_v54 }
  0xf7   : > { %2026 = vmatprep.subr.bf16.mxu0 %v1730_v59 }
  0xfe   : > { %2027 = vmatpush1.bf16.xpose.msra.mxu0 %v1447_v4 }
  0xff   : > { %2028 = vmatprep.subr.bf16.mxu0 %v1733_v9 }
 0x106   : > { %2029 = vmatpush1.bf16.xpose.msra.mxu0 %v1459_v18 }
 0x107   : > { %2030 = vmatprep.subr.bf16.mxu0 %v1736_v23 }
 0x10e   : > { %2031 = vmatpush1.bf16.xpose.msra.mxu0 %v1471_v32 }
 0x10f   : > { %2032 = vmatprep.subr.bf16.mxu0 %v1739_v36 }
 0x116   : > { %2033 = vmatpush1.bf16.xpose.msra.mxu0 %v1483_v39 }
 0x11d   : > { %2035 = vmatmul.mubr.bf16.vlgmr.msra.gmra.mrb[0].mxu0 %v2653_v40 }
 0x137   : > { %v1879_v45 = vpop.permute.xlu0 %1878 }
 0x13b   : > { %v1884_v47 = vpop.permute.xlu0 %1883 }
 0x192   : > { %v1950_v41 = vpop.f32.mrb[0].mxu1 }
 0x193   : > { %v1952_v42 = vpop.f32.mrb[1].mxu1  ;;  %v1951_v46 = vadd.f32 %v1950_v41, %v1879_v45 }
 0x194   : > { %v1954_v43 = vpop.f32.mrb[2].mxu1  ;;  %v1953_v48 = vadd.f32 %v1952_v42, %v1879_v45 }
 0x195   : > { %v1956_v44 = vpop.f32.mrb[3].mxu1  ;;  %v1955_v50 = vadd.f32 %v1954_v43, %v1884_v47 }
 0x196   : > { %v1957_v53 = vadd.f32 %v1956_v44, %v1884_v47 }
 0x1f0   : > { %v2036_v49 = vpop.f32.mrb[0].mxu0 }
 0x1f1   : > { %v2432_v51 = vadd.f32 %v2036_v49, %v1951_v46  ;;  %v2038_v52 = vpop.f32.mrb[1].mxu0 }
 0x1f2   : > { %v2434_v54 = vadd.f32 %v2038_v52, %v1953_v48  ;;  %v2040_v55 = vpop.f32.mrb[2].mxu0 }
 0x1f3   : > { %2045 = vst [vmem:[%s163_s29] sm:$0xff] %v2432_v51  ;;  %v2436_v56 = vadd.f32 %v2040_v55, %v1955_v50  ;;  %v2042_v57 = vpop.f32.mrb[3].mxu0 }
 0x1f4   : > { %2046 = vst [vmem:[%s163_s29 + $0x8] sm:$0xff] %v2434_v54  ;;  %v2438_v58 = vadd.f32 %v2042_v57, %v1957_v53 }
 0x1f5   : > { %2047 = vst [vmem:[%s163_s29 + $0x10] sm:$0xff] %v2436_v56 }
 0x1f6   : > { %2048 = vst [vmem:[%s163_s29 + $0x18] sm:$0xff] %v2438_v58 }
 0x1f7   : > { %2669 = shalt.err (!%p2666_p3)
}
 0x1f8   : > { %s2670_s17 = scalar_lea.hbm %s3054_s7, 512  ;;  %s2674_s24 = scalar_lea.hbm %s3100_s3, 1024 }
 0x1f9   : > { %p2671_p4 = scmp.ne.s32.totalorder %s3054_s7, %s2670_s17  ;;  %p2675_p9 = scmp.lt.u32.totalorder %s3054_s7, %s3100_s3 }
 0x1fa   : > { %p2676_p10 = scmp.lt.u32.totalorder %s2674_s24, %s2670_s17  ;;  %p2678_p12 = scmp.lt.u32.totalorder %s2670_s17, %s3054_s7 }
 0x1fb   : > { %p2672_p7 = pnand %p2671_p4, %p2782_p5 }
 0x1fc   : > { %p2677_p11 = por %p2676_p10, %p2675_p9 }
 0x1fd   : > { %p2673_p8 = pneg %p2672_p7 }
 0x1fe   : > { %p2679_p13 = por %p2678_p12, %p2677_p11 }
 0x200   : > { %p2680_p0 = pnand %p2679_p13, %p2673_p8 }
 0x202   : > { %2683 = shalt.err (!%p2680_p0)
}
 0x203   : > { %s2722_s27 = smov 256   ;;  %s2723_s28 = smov 16  }
 0x204   : > { %2444 = dma.vmem_to_hbm [thread:$0]  (%p2782_p5), %s3049_s30, 512, %s3054_s7, %s3056_s16, %s2722_s27, %s2722_s27, %s2723_s28  }
 0x205 PF: > { %p2450_p1 = scmp.ge.s32.totalorder %s2718_s15, 2  ;;  %s2078_s29 = sand.u32 1, %s2706_s12  }
 0x206   : > { %s2079_s4 = scalar_lea.sflag [#allocation4], %s2078_s29 }
 0x207   : > { %p2447_p2 = pnand %p2450_p1, %p2786_p6 }
 0x209   : > { %2701 = dma.done.wait (!%p2447_p2), %s2079_s4, 512  }
 0x20a   : > { %2703 = vsyncadd (!%p2447_p2), %s2079_s4, 4294966784  ;;  %p13_p3 = scmp.ge.s32.totalorder %s2769_s18, 4   ;;  %s3103_s12 = smov %s2710_s13 }
 0x20b   : > { %s3104_s13 = smov %s2714_s14  ;;  %s3105_s14 = smov %s2780_s21 }
 0x20c   : > { %s3106_s15 = smov %s2769_s18  ;;  %15 = sbr.rel (!%p13_p3) target bundleno = 3 (0x3), region = 68 }
 0x213   :  { %2084 = vsyncpa [#allocation4], 1 }
 0x214   :  { %2086 = vsyncpa [#allocation4 + $0x1], 1 }

</bundles_post_ra>
